<compile_context>
chip_gen: v7x
topology: tpu7x:2x2x1
jax: 0.10.0
libtpu: 0.0.40
codegen_flags: <defaults>
</compile_context>

<pallas_src>
import jax
import jax.numpy as jnp
from jax.experimental import pallas as pl
from jax.experimental.pallas import tpu as pltpu


def _vmem_budget_bytes():
    """Per-chip VMEM budget: derive from the actual part (128 MiB v5e/v6e, 64 MiB v7x)."""
    try:
        cap = int(pltpu.get_tpu_info().vmem_capacity_bytes)
    except Exception:
        cap = 64 * 1024 * 1024                       # conservative v7x default
    vmem_limit = min(cap * 3 // 4, 96 * 1024 * 1024)  # leave headroom for Mosaic scratch
    block_budget = vmem_limit // 2                    # for 2x double-buffered (in + out)
    return vmem_limit, block_budget


def _pick_batch_tile(B, bytes_per_image, itemsize, block_budget):
    """Largest divisor of B whose double-buffered (in+out) tiles fit the VMEM budget,
    capped so B >= 2 still yields >= 2 grid steps (v7x has 2 TensorCores), preferring
    a sublane-aligned tile (multiple of 8 for f32, 16 for bf16, 32 for int8)."""
    cap = max(1, block_budget // max(2 * bytes_per_image, 1))  # 2x: double buffering
    if B >= 2:
        cap = min(cap, (B + 1) // 2)     # keep >= 2 grid steps for megacore sharding
    cap = min(cap, B)
    sublane = 8 * max(1, 4 // max(itemsize, 1))       # f32 -> 8, bf16 -> 16, int8 -> 32
    best, best_aligned = 1, None
    for d in range(1, cap + 1):
        if B % d == 0:
            best = d
            if d % sublane == 0:
                best_aligned = d
    return best_aligned if best_aligned is not None else best


def option_a_shortcut(x, planes):
    """Pallas TPU implementation of the LambdaLayer option-A shortcut:
    F.pad(x[:, :, ::2, ::2], (0, 0, 0, 0, planes//4, planes//4), 'constant', 0)."""
    B, C, H, W = x.shape
    ch_pad = planes // 4
    out_ch = C + 2 * ch_pad
    H2 = (H + 1) // 2                    # matches ::2 semantics (ceil div)
    W2 = (W + 1) // 2
    L = H2 * W2
    itemsize = jnp.dtype(x.dtype).itemsize

    # Wrapper-side layout plumbing: the stride-2 subsample is one XLA strided slice and
    # the reshapes below are free (contiguous).  The kernel never sees a strided gather.
    sub = x[:, :, ::2, ::2]              # (B, C, H2, W2)

    vmem_limit, block_budget = _vmem_budget_bytes()
    bytes_per_image = (C + out_ch) * L * itemsize
    bt = _pick_batch_tile(B, bytes_per_image, itemsize, block_budget)
    nb = B // bt                         # bt divides B by construction

    lane_dense = (ch_pad * L) % 128 == 0 and (C * L) % 128 == 0
    if lane_dense:
        # Flatten channel x spatial into one lane axis, refolded into 128-lane rows:
        # all loads/stores are unmasked and band boundaries land on whole rows.
        rows_in = (C * L) // 128
        rows_out = (out_ch * L) // 128
        lo = (ch_pad * L) // 128
        last = 128
    else:
        # General fallback: band along the channel axis (full-extent trailing dims).
        rows_in, rows_out, lo, last = C, out_ch, ch_pad, L
    hi = lo + rows_in

    x_in = sub.reshape(nb, bt, rows_in, last)

    def kernel(x_ref, o_ref):
        # x_ref: (bt, rows_in, last)   o_ref: (bt, rows_out, last)   last dim lane-dense
        if lo > 0:                                            # low-channel zero band
            o_ref[:, :lo, :] = jnp.zeros((bt, lo, last), o_ref.dtype)
        if hi < rows_out:                                     # high-channel zero band
            o_ref[:, hi:, :] = jnp.zeros((bt, rows_out - hi, last), o_ref.dtype)
        # data band — stored exactly once (no zero-init then overwrite)
        o_ref[:, lo:hi, :] = x_ref[...].astype(o_ref.dtype)

    bytes_accessed = (C + out_ch) * L * B * itemsize          # pure-bandwidth op

    out = pl.pallas_call(
        kernel,
        out_shape=jax.ShapeDtypeStruct((nb, bt, rows_out, last), x.dtype),
        grid=(nb,),
        in_specs=[pl.BlockSpec((None, bt, rows_in, last), lambda b: (b, 0, 0, 0))],
        out_specs=pl.BlockSpec((None, bt, rows_out, last), lambda b: (b, 0, 0, 0)),
        compiler_params=pltpu.CompilerParams(
            dimension_semantics=("parallel",),
            vmem_limit_bytes=vmem_limit,
        ),
        cost_estimate=pl.CostEstimate(
            flops=0, transcendentals=0, bytes_accessed=bytes_accessed),
    )(x_in)

    return out.reshape(B, out_ch, H2, W2)


class LambdaLayer:
    """Mirror of the PyTorch LambdaLayer: applies a user-supplied callable."""

    def __init__(self, lambd):
        self.lambd = lambd

    def __call__(self, x):
        return self.lambd(x)


def _reference(x, planes):
    p = planes // 4
    return jnp.pad(x[:, :, ::2, ::2], ((0, 0), (p, p), (0, 0), (0, 0)))


if __name__ == "__main__":
    key = jax.random.PRNGKey(0)

    # --- primary case: lane-dense path (band boundaries are 128-aligned) -------------
    B, C, H, W = 2, 4, 16, 16
    planes = 2 * C                       # canonical ResNet option-A usage
    x = jax.random.normal(key, (B, C, H, W), dtype=jnp.float32)

    layer = LambdaLayer(lambda t: option_a_shortcut(t, planes))
    fwd = jax.jit(layer.__call__)
    out = fwd(x)
    jax.block_until_ready(out)

    ref = _reference(x, planes)
    assert out.shape == ref.shape, (out.shape, ref.shape)
    assert out.dtype == x.dtype, (out.dtype, x.dtype)
    assert jnp.allclose(out, ref), "mismatch vs reference (lane-dense path)"

    # --- secondary case: odd spatial dims / unaligned bands -> fallback path ---------
    B2, C2, H2s, W2s = 2, 3, 10, 10
    planes2 = 4                          # ch_pad = 1, L = 25 -> channel-banded fallback
    x2 = jax.random.normal(jax.random.PRNGKey(1), (B2, C2, H2s, W2s), dtype=jnp.float32)
    out2 = jax.jit(lambda t: option_a_shortcut(t, planes2))(x2)
    jax.block_until_ready(out2)
    ref2 = _reference(x2, planes2)
    assert out2.shape == ref2.shape, (out2.shape, ref2.shape)
    assert jnp.allclose(out2, ref2), "mismatch vs reference (fallback path)"

    print("KERNEL_OK")
</pallas_src>

<mosaic_0001>
module attributes {stable_mosaic.version = 11 : i64} {
  func.func @kernel(%arg0: i32, %arg1: memref<1x1x2x128xf32, #tpu.memory_space<vmem>>, %arg2: memref<1x1x4x128xf32, #tpu.memory_space<vmem>>) attributes {dimension_semantics = [#tpu.dimension_semantics<parallel>], iteration_bounds = array<i64: 2>, scalar_prefetch = 0 : i64, scratch_operands = 0 : i64, tpu.core_type = #tpu.core_type<tc>, window_params = [{transform_indices = @transform_0, window_bounds = array<i64: 1, 1, 2, 128>}, {transform_indices = @transform_1, window_bounds = array<i64: 1, 1, 4, 128>}]} {
    %cst = arith.constant 0.000000e+00 : f32
    %0 = vector.broadcast %cst : f32 to vector<1x1x128xf32>
    %c0 = arith.constant 0 : index
    %c0_0 = arith.constant 0 : index
    %c0_1 = arith.constant 0 : index
    %c0_2 = arith.constant 0 : index
    %1 = vector.load %arg2[%c0, %c0_0, %c0_1, %c0_2] : memref<1x1x4x128xf32, #tpu.memory_space<vmem>>, vector<1x1x1x128xf32>
    %2 = vector.shape_cast %1 : vector<1x1x1x128xf32> to vector<1x1x128xf32>
    %3 = vector.shape_cast %0 : vector<1x1x128xf32> to vector<1x1x1x128xf32>
    tpu.vector_store %arg2[%c0, %c0_0, %c0_1, %c0_2], %3 {strides = array<i32>} : memref<1x1x4x128xf32, #tpu.memory_space<vmem>>, vector<1x1x1x128xf32>,
    %cst_3 = arith.constant 0.000000e+00 : f32
    %4 = vector.broadcast %cst_3 : f32 to vector<1x1x128xf32>
    %c0_4 = arith.constant 0 : index
    %c0_5 = arith.constant 0 : index
    %c3 = arith.constant 3 : index
    %c0_6 = arith.constant 0 : index
    %5 = vector.load %arg2[%c0_4, %c0_5, %c3, %c0_6] : memref<1x1x4x128xf32, #tpu.memory_space<vmem>>, vector<1x1x1x128xf32>
    %6 = vector.shape_cast %5 : vector<1x1x1x128xf32> to vector<1x1x128xf32>
    %7 = vector.shape_cast %4 : vector<1x1x128xf32> to vector<1x1x1x128xf32>
    tpu.vector_store %arg2[%c0_4, %c0_5, %c3, %c0_6], %7 {strides = array<i32>} : memref<1x1x4x128xf32, #tpu.memory_space<vmem>>, vector<1x1x1x128xf32>,
    %c0_7 = arith.constant 0 : index
    %c0_8 = arith.constant 0 : index
    %c0_9 = arith.constant 0 : index
    %c0_10 = arith.constant 0 : index
    %8 = vector.load %arg1[%c0_7, %c0_8, %c0_9, %c0_10] : memref<1x1x2x128xf32, #tpu.memory_space<vmem>>, vector<1x1x2x128xf32>
    %9 = vector.shape_cast %8 : vector<1x1x2x128xf32> to vector<1x2x128xf32>
    %c0_11 = arith.constant 0 : index
    %c0_12 = arith.constant 0 : index
    %c1 = arith.constant 1 : index
    %c0_13 = arith.constant 0 : index
    %10 = vector.load %arg2[%c0_11, %c0_12, %c1, %c0_13] : memref<1x1x4x128xf32, #tpu.memory_space<vmem>>, vector<1x1x2x128xf32>
    %11 = vector.shape_cast %10 : vector<1x1x2x128xf32> to vector<1x2x128xf32>
    %12 = vector.shape_cast %9 : vector<1x2x128xf32> to vector<1x1x2x128xf32>
    tpu.vector_store %arg2[%c0_11, %c0_12, %c1, %c0_13], %12 {strides = array<i32>} : memref<1x1x4x128xf32, #tpu.memory_space<vmem>>, vector<1x1x2x128xf32>,
    return
  }
  func.func @transform_0(%arg0: i32) -> (i32, i32, i32, i32) {
    %c0_i32 = arith.constant 0 : i32
    %c0_i32_0 = arith.constant 0 : i32
    %c0_i32_1 = arith.constant 0 : i32
    %c0_i32_2 = arith.constant 0 : i32
    return %arg0, %c0_i32, %c0_i32_0, %c0_i32_1 : i32, i32, i32, i32
  }
  func.func @transform_1(%arg0: i32) -> (i32, i32, i32, i32) {
    %c0_i32 = arith.constant 0 : i32
    %c0_i32_0 = arith.constant 0 : i32
    %c0_i32_1 = arith.constant 0 : i32
    %c0_i32_2 = arith.constant 0 : i32
    return %arg0, %c0_i32, %c0_i32_0, %c0_i32_1 : i32, i32, i32, i32
  }
}

</mosaic_0001>

<bundles_post_ra>
// kernel: a_call__.1
= control target key start
LH: loop header
LB: loop body
LE: loop exit
PB: predicated region body
PF: predicated region fallthrough
CT: control target
= control target key end

     0   :  { %s191_s6 = smov 0   ;;  %s212_s0 = inlined_call_operand.vmem [shape: f32[2,1,2,128], index: 0, kind: input, shape index: {}]   ;;  %s213_s1 = inlined_call_operand.vmem [shape: f32[2,1,4,128], index: 1, kind: output, shape index: {}]  }
   0x1 LB: > { %s169_s7 = sadd.s32 4294967295, %s193_s6   ;;  %p173_p0 = scmp.ge.s32.totalorder %s193_s6, 1  ;;  %s193_s6 = sphi %s191_s6, %s11_s6  }
   0x2   : > { %p86_p1 = scmp.lt.s32.totalorder %s193_s6, 3 }
   0x4   : > { %p87_p2 = pnand %p173_p0, %p86_p1 }
   0x5   : > { %p104_p3 = scmp.lt.s32.totalorder (!%p87_p2), %s169_s7, 1  ;;  %v195_v0 = vmov (!%p87_p2), 0.0  }
   0x6   : > { %90 = sbr.rel (%p87_p2) target bundleno = 18 (0x12), region = 24 }
   0xd   : > { %s215_s7 = smov (!%p104_p3, %s169_s7), 1 }
   0xe   : > { %s175_s8 = sshll.u32 %s215_s7, 2  ;;  %s174_s9 = sshll.u32 %s215_s7, 1 }
   0xf   : > { %s111_s12 = scalar_lea.vmem %s213_s1, %s175_s8  ;;  %s107_s15 = scalar_lea.vmem %s212_s0, %s174_s9 }
  0x10   : > { %112 = vst [vmem:[%s111_s12] sm:$0x1] %v195_v0  ;;  %113 = vst [vmem:[%s111_s12 + $0x3] sm:$0x1] %v195_v0  ;;  %v114_v1 = vld [vmem:[%s107_s15] sm:$0x3] }
  0x11   : > { %115 = vst [vmem:[%s111_s12 + $0x1] sm:$0x3] %v114_v1 }
  0x12 PF: > { %s11_s6 = sadd.s32 1, %s193_s6  }
  0x13   : > { %p8_p4 = scmp.ge.s32.totalorder %s11_s6, 4  }
  0x15   :  { %10 = sbr.rel (!%p8_p4) target bundleno = 1 (0x1), region = 54 }

</bundles_post_ra>
